<compile_context>
chip_gen: v7x
topology: tpu7x:2x2x1
jax: 0.10.0
libtpu: 0.0.40
codegen_flags: <defaults>
</compile_context>

<pallas_src>
import functools

import jax
import jax.numpy as jnp
from jax.experimental import pallas as pl
from jax.experimental.pallas import tpu as pltpu


_LANE = 128


def _make_divisible(v, divisor=8, min_value=None):
    if min_value is None:
        min_value = divisor
    new_v = max(min_value, int(v + divisor / 2) // divisor * divisor)
    if new_v < 0.9 * v:
        new_v += divisor
    return new_v


def _cdiv(a, b):
    return (a + b - 1) // b


def _round_up(v, m):
    return _cdiv(v, m) * m


def _vmem_budget_and_limit():
    """Generation-aware VMEM budgets (data budget, scoped vmem limit).

    v5e/v6e: 128 MiB VMEM per TensorCore -> large budget keeps big C*HW slabs on
    the single-pass fused path.  v7x (or unknown): 64 MiB -> conservative budget
    so double-buffered in+out blocks plus weights/scratch fit.
    """
    cap = None
    try:
        cap = getattr(pltpu.get_tpu_info(), "vmem_capacity_bytes", None)
    except Exception:
        cap = None
    if cap is not None and cap >= 128 * 1024 * 1024:
        return 96 * 1024 * 1024, 110 * 1024 * 1024
    return 40 * 1024 * 1024, 48 * 1024 * 1024


def _choose_block_batch(n, per_sample_bytes, budget, min_steps=4):
    """Largest divisor of n whose double-buffered in+out blocks fit `budget`
    while keeping >= min_steps grid steps (DMA/compute overlap; >=2 parallel
    steps feeds both v7x TensorCores).  Prefers multiples of 8 (f32 sublane
    packing of the (NB, C) pooled mean)."""
    want_steps = min(min_steps, n)
    max_nb = max(1, budget // (4 * per_sample_bytes))
    cands = [d for d in range(1, n + 1)
             if n % d == 0 and d <= max_nb and n // d >= want_steps]
    if not cands:
        return 1
    mult8 = [d for d in cands if d % 8 == 0]
    return max(mult8) if mult8 else max(cands)


# ---------------------------------------------------------------------------
# Path A: fully fused kernel -- one (NB, C, HW) slab per grid step.
# ---------------------------------------------------------------------------
def _se_fused_kernel(x_ref, w1t_ref, b1_ref, w2t_ref, b2_ref, o_ref, *, inv_hw):
    x = x_ref[...]                                             # (NB, C, HW), native dtype
    # Global average pool: f32 accumulation over the true (unpadded) HW.
    mean = jnp.sum(x, axis=-1, dtype=jnp.float32) * inv_hw     # (NB, C)
    # fc1 (1x1 conv == matmul) + bias + ReLU.  Dots run in the weight dtype
    # (bf16 weights stay on the native MXU path on v5e) with f32 accumulation.
    h = jnp.dot(mean.astype(w1t_ref.dtype), w1t_ref[...],
                preferred_element_type=jnp.float32) + b1_ref[...]
    h = jnp.maximum(h, 0.0)
    s = jnp.dot(h.astype(w2t_ref.dtype), w2t_ref[...],
                preferred_element_type=jnp.float32) + b2_ref[...]
    # Hardsigmoid.
    s = jnp.clip((s + 3.0) / 6.0, 0.0, 1.0)
    # Broadcast multiply in the input dtype (no full-slab f32 copy of x).
    o_ref[...] = (x * s.astype(x.dtype)[:, :, None]).astype(o_ref.dtype)


# ---------------------------------------------------------------------------
# Path B: scale computed in plain JAX (tiny), broadcast multiply tiled over HW.
# ---------------------------------------------------------------------------
def _scale_mul_kernel(x_ref, s_ref, o_ref):
    # x_ref: (1, C, HWT); s_ref: whole (N, C, 1) scale array resident in VMEM.
    n = pl.program_id(0)
    scale = s_ref[n]                                           # (C, 1)
    o_ref[...] = (x_ref[...] * scale[None]).astype(o_ref.dtype)


def fused_squeeze_excitation(x_nchw, w1, b1, w2, b2, *, force_split=False):
    """x_nchw: (N, C, H, W).  w1: (Csq, C), b1: (Csq,), w2: (C, Csq), b2: (C,)."""
    N, C, H, W = x_nchw.shape
    HW = H * W
    Csq = w1.shape[0]
    itemsize = x_nchw.dtype.itemsize
    budget, vmem_limit = _vmem_budget_and_limit()

    # No host-side HW padding: the kernel's last block dim is the full HW extent,
    # so there is no extra pad/slice HBM round trip and no inflated traffic.
    x = x_nchw.reshape(N, C, HW)

    # Weights stay in the input dtype; biases are f32 (added to f32 dot results).
    w1t = w1.T.astype(x.dtype)                       # (C, Csq)
    w2t = w2.T.astype(x.dtype)                       # (Csq, C)
    b1r = b1.reshape(1, Csq).astype(jnp.float32)
    b2r = b2.reshape(1, C).astype(jnp.float32)

    per_sample_bytes = C * HW * itemsize
    fits_fused = (4 * per_sample_bytes) <= budget and not force_split

    if fits_fused:
        NB = _choose_block_batch(N, per_sample_bytes, budget)

        cost = pl.CostEstimate(
            flops=int(2 * N * C * HW + 4 * N * C * Csq),
            transcendentals=0,
            bytes_accessed=int(2 * N * C * HW * itemsize
                               + (w1.size + b1.size + w2.size + b2.size) * itemsize),
        )

        out = pl.pallas_call(
            functools.partial(_se_fused_kernel, inv_hw=1.0 / HW),
            out_shape=jax.ShapeDtypeStruct((N, C, HW), x.dtype),
            grid_spec=pltpu.PrefetchScalarGridSpec(
                num_scalar_prefetch=0,
                grid=(N // NB,),
                in_specs=[
                    pl.BlockSpec((NB, C, HW), lambda n: (n, 0, 0)),
                    pl.BlockSpec((C, Csq), lambda n: (0, 0)),
                    pl.BlockSpec((1, Csq), lambda n: (0, 0)),
                    pl.BlockSpec((Csq, C), lambda n: (0, 0)),
                    pl.BlockSpec((1, C), lambda n: (0, 0)),
                ],
                out_specs=pl.BlockSpec((NB, C, HW), lambda n: (n, 0, 0)),
            ),
            compiler_params=pltpu.CompilerParams(
                dimension_semantics=("parallel",),
                vmem_limit_bytes=vmem_limit,
            ),
            cost_estimate=cost,
        )(x, w1t, b1r, w2t, b2r)

        return out.reshape(N, C, H, W)

    # ----- Path B: per-sample slab too big for VMEM -----
    # The scale vector is tiny; compute it in plain JAX.
    mean = jnp.mean(x.astype(jnp.float32), axis=-1)                          # (N, C)
    h = jnp.maximum(mean @ w1.T.astype(jnp.float32) + b1.astype(jnp.float32), 0.0)
    s = h @ w2.T.astype(jnp.float32) + b2.astype(jnp.float32)
    s = jnp.clip((s + 3.0) / 6.0, 0.0, 1.0).astype(x.dtype)
    s3 = s.reshape(N, C, 1)

    # Moderate lane-dense tiles (~2 MiB) with >= ~4 HW tiles: already at the HBM
    # roofline while preserving DMA-in / compute / writeback overlap.
    target_block_bytes = 2 * 1024 * 1024
    HWT = max(_LANE, (target_block_bytes // (C * itemsize)) // _LANE * _LANE)
    HWT = min(HWT, max(_LANE, _round_up(_cdiv(HW, 4), _LANE)))
    HWT = min(HWT, _round_up(HW, _LANE))
    n_hw_tiles = _cdiv(HW, HWT)          # last tile may be partial -> masked stores

    cost = pl.CostEstimate(
        flops=int(N * C * HW),
        transcendentals=0,
        bytes_accessed=int(2 * N * C * HW * itemsize),
    )

    out = pl.pallas_call(
        _scale_mul_kernel,
        out_shape=jax.ShapeDtypeStruct((N, C, HW), x.dtype),
        grid_spec=pltpu.PrefetchScalarGridSpec(
            num_scalar_prefetch=0,
            grid=(N, n_hw_tiles),
            in_specs=[
                pl.BlockSpec((1, C, HWT), lambda n, t: (n, 0, t)),
                # Whole scale array (N*C*itemsize bytes) resident in VMEM:
                # one DMA total, indexed per-sample inside the kernel.
                pl.BlockSpec((N, C, 1), lambda n, t: (0, 0, 0)),
            ],
            out_specs=pl.BlockSpec((1, C, HWT), lambda n, t: (n, 0, t)),
        ),
        compiler_params=pltpu.CompilerParams(
            dimension_semantics=("parallel", "parallel"),
            vmem_limit_bytes=vmem_limit,
        ),
        cost_estimate=cost,
    )(x, s3)

    return out.reshape(N, C, H, W)


def _reference(x, w1, b1, w2, b2):
    mean = jnp.mean(x, axis=(2, 3))                      # (N, C)
    h = jnp.maximum(mean @ w1.T + b1, 0.0)               # (N, Csq)
    s = h @ w2.T + b2                                    # (N, C)
    s = jnp.clip((s + 3.0) / 6.0, 0.0, 1.0)
    return x * s[:, :, None, None]


if __name__ == "__main__":
    # Small, module-consistent shapes.
    N, C, H, W = 2, 32, 16, 16
    squeeze_factor = 4
    Csq = _make_divisible(C // squeeze_factor, 8)        # = 8

    key = jax.random.PRNGKey(0)
    kx, kw1, kb1, kw2, kb2 = jax.random.split(key, 5)

    x = jax.random.normal(kx, (N, C, H, W), dtype=jnp.float32)
    # fc1: Conv2d(C, Csq, kernel_size=1, bias=True) -> weight (Csq, C)
    w1 = jax.random.normal(kw1, (Csq, C), dtype=jnp.float32) * 0.1
    b1 = jax.random.normal(kb1, (Csq,), dtype=jnp.float32) * 0.1
    # fc2: Conv2d(Csq, C, kernel_size=1, bias=True) -> weight (C, Csq)
    w2 = jax.random.normal(kw2, (C, Csq), dtype=jnp.float32) * 0.1
    b2 = jax.random.normal(kb2, (C,), dtype=jnp.float32) * 0.1

    ref = _reference(x, w1, b1, w2, b2)

    # Path A (fused single-pass, unpadded HW, divisor-of-N batching).
    out = jax.block_until_ready(fused_squeeze_excitation(x, w1, b1, w2, b2))
    assert out.shape == (N, C, H, W)
    assert jnp.allclose(out, ref, atol=1e-5, rtol=1e-5), "fused path mismatch vs reference"

    # Path B (HW-split fallback for large feature maps), exercised explicitly.
    out_b = jax.block_until_ready(
        fused_squeeze_excitation(x, w1, b1, w2, b2, force_split=True))
    assert jnp.allclose(out_b, ref, atol=1e-5, rtol=1e-5), "split path mismatch vs reference"

    print("KERNEL_OK")
</pallas_src>

<mosaic_0001>
module attributes {stable_mosaic.version = 11 : i64} {
  func.func @_se_fused_kernel(%arg0: i32, %arg1: memref<1x32x256xf32, #tpu.memory_space<vmem>>, %arg2: memref<32x8xf32, #tpu.memory_space<vmem>>, %arg3: memref<1x8xf32, #tpu.memory_space<vmem>>, %arg4: memref<8x32xf32, #tpu.memory_space<vmem>>, %arg5: memref<1x32xf32, #tpu.memory_space<vmem>>, %arg6: memref<1x32x256xf32, #tpu.memory_space<vmem>>) attributes {dimension_semantics = [#tpu.dimension_semantics<parallel>], iteration_bounds = array<i64: 2>, scalar_prefetch = 0 : i64, scratch_operands = 0 : i64, tpu.core_type = #tpu.core_type<tc>, window_params = [{transform_indices = @transform_0, window_bounds = array<i64: 1, 32, 256>}, {pipeline_mode = #tpu.pipeline_mode<synchronous>, transform_indices = @transform_1, window_bounds = array<i64: 32, 8>}, {pipeline_mode = #tpu.pipeline_mode<synchronous>, transform_indices = @transform_2, window_bounds = array<i64: 1, 8>}, {pipeline_mode = #tpu.pipeline_mode<synchronous>, transform_indices = @transform_3, window_bounds = array<i64: 8, 32>}, {pipeline_mode = #tpu.pipeline_mode<synchronous>, transform_indices = @transform_4, window_bounds = array<i64: 1, 32>}, {transform_indices = @transform_5, window_bounds = array<i64: 1, 32, 256>}]} {
    %c0 = arith.constant 0 : index
    %c0_0 = arith.constant 0 : index
    %c0_1 = arith.constant 0 : index
    %0 = vector.load %arg1[%c0, %c0_0, %c0_1] : memref<1x32x256xf32, #tpu.memory_space<vmem>>, vector<1x32x256xf32>
    %cst = arith.constant dense<0.000000e+00> : vector<1x32xf32>
    %1 = vector.multi_reduction <add>, %0, %cst [2] : vector<1x32x256xf32> to vector<1x32xf32>
    %cst_2 = arith.constant 3.906250e-03 : f32
    %2 = vector.broadcast %cst_2 : f32 to vector<1x32xf32>
    %3 = arith.mulf %1, %2 : vector<1x32xf32>
    %c0_3 = arith.constant 0 : index
    %c0_4 = arith.constant 0 : index
    %4 = vector.load %arg2[%c0_3, %c0_4] : memref<32x8xf32, #tpu.memory_space<vmem>>, vector<32x8xf32>
    %cst_5 = arith.constant dense<0.000000e+00> : vector<1x8xf32>
    %5 = tpu.matmul %3, %4, %cst_5 {dimension_numbers = #tpu.dot_dimension_numbers<[1], [0], [0], [1], [0, 0, 1, 1], [], []>} : vector<1x32xf32>, vector<32x8xf32>, vector<1x8xf32> -> vector<1x8xf32>
    %c0_6 = arith.constant 0 : index
    %c0_7 = arith.constant 0 : index
    %6 = vector.load %arg3[%c0_6, %c0_7] : memref<1x8xf32, #tpu.memory_space<vmem>>, vector<1x8xf32>
    %7 = arith.addf %5, %6 : vector<1x8xf32>
    %cst_8 = arith.constant 0.000000e+00 : f32
    %8 = vector.broadcast %cst_8 : f32 to vector<1x8xf32>
    %9 = arith.maximumf %7, %8 : vector<1x8xf32>
    %c0_9 = arith.constant 0 : index
    %c0_10 = arith.constant 0 : index
    %10 = vector.load %arg4[%c0_9, %c0_10] : memref<8x32xf32, #tpu.memory_space<vmem>>, vector<8x32xf32>
    %cst_11 = arith.constant dense<0.000000e+00> : vector<1x32xf32>
    %11 = tpu.matmul %9, %10, %cst_11 {dimension_numbers = #tpu.dot_dimension_numbers<[1], [0], [0], [1], [0, 0, 1, 1], [], []>} : vector<1x8xf32>, vector<8x32xf32>, vector<1x32xf32> -> vector<1x32xf32>
    %c0_12 = arith.constant 0 : index
    %c0_13 = arith.constant 0 : index
    %12 = vector.load %arg5[%c0_12, %c0_13] : memref<1x32xf32, #tpu.memory_space<vmem>>, vector<1x32xf32>
    %13 = arith.addf %11, %12 : vector<1x32xf32>
    %cst_14 = arith.constant 3.000000e+00 : f32
    %14 = vector.broadcast %cst_14 : f32 to vector<1x32xf32>
    %15 = arith.addf %13, %14 : vector<1x32xf32>
    %cst_15 = arith.constant 6.000000e+00 : f32
    %16 = vector.broadcast %cst_15 : f32 to vector<1x32xf32>
    %17 = arith.divf %15, %16 : vector<1x32xf32>
    %cst_16 = arith.constant 0.000000e+00 : f32
    %cst_17 = arith.constant 1.000000e+00 : f32
    %18 = vector.broadcast %cst_16 : f32 to vector<1x32xf32>
    %19 = arith.maximumf %18, %17 : vector<1x32xf32>
    %20 = vector.broadcast %cst_17 : f32 to vector<1x32xf32>
    %21 = arith.minimumf %20, %19 : vector<1x32xf32>
    %22 = vector.shape_cast %21 : vector<1x32xf32> to vector<1x32x1xf32>
    %23 = vector.broadcast %22 : vector<1x32x1xf32> to vector<1x32x256xf32>
    %24 = arith.mulf %0, %23 : vector<1x32x256xf32>
    %c0_18 = arith.constant 0 : index
    %c0_19 = arith.constant 0 : index
    %c0_20 = arith.constant 0 : index
    %25 = vector.load %arg6[%c0_18, %c0_19, %c0_20] : memref<1x32x256xf32, #tpu.memory_space<vmem>>, vector<1x32x256xf32>
    tpu.vector_store %arg6[%c0_18, %c0_19, %c0_20], %24 {strides = array<i32>} : memref<1x32x256xf32, #tpu.memory_space<vmem>>, vector<1x32x256xf32>,
    return
  }
  func.func @transform_0(%arg0: i32) -> (i32, i32, i32) {
    %c0_i32 = arith.constant 0 : i32
    %c0_i32_0 = arith.constant 0 : i32
    %c0_i32_1 = arith.constant 0 : i32
    return %arg0, %c0_i32, %c0_i32_0 : i32, i32, i32
  }
  func.func @transform_1(%arg0: i32) -> (i32, i32) {
    %c0_i32 = arith.constant 0 : i32
    %c0_i32_0 = arith.constant 0 : i32
    %c0_i32_1 = arith.constant 0 : i32
    return %c0_i32, %c0_i32_0 : i32, i32
  }
  func.func @transform_2(%arg0: i32) -> (i32, i32) {
    %c0_i32 = arith.constant 0 : i32
    %c0_i32_0 = arith.constant 0 : i32
    %c0_i32_1 = arith.constant 0 : i32
    return %c0_i32, %c0_i32_0 : i32, i32
  }
  func.func @transform_3(%arg0: i32) -> (i32, i32) {
    %c0_i32 = arith.constant 0 : i32
    %c0_i32_0 = arith.constant 0 : i32
    %c0_i32_1 = arith.constant 0 : i32
    return %c0_i32, %c0_i32_0 : i32, i32
  }
  func.func @transform_4(%arg0: i32) -> (i32, i32) {
    %c0_i32 = arith.constant 0 : i32
    %c0_i32_0 = arith.constant 0 : i32
    %c0_i32_1 = arith.constant 0 : i32
    return %c0_i32, %c0_i32_0 : i32, i32
  }
  func.func @transform_5(%arg0: i32) -> (i32, i32, i32) {
    %c0_i32 = arith.constant 0 : i32
    %c0_i32_0 = arith.constant 0 : i32
    %c0_i32_1 = arith.constant 0 : i32
    return %arg0, %c0_i32, %c0_i32_0 : i32, i32, i32
  }
}

</mosaic_0001>

<bundles_post_ra>
// kernel: tpu_custom_call.1
= control target key start
LH: loop header
LB: loop body
LE: loop exit
PB: predicated region body
PF: predicated region fallthrough
CT: control target
= control target key end

     0   :  { %10 = vsyncpa [#allocation3], 0  ;;  %s1036_s0 = inlined_call_operand.hbm [shape: f32[2,32,256], index: 0, kind: input, shape index: {}]   ;;  %s1037_s1 = inlined_call_operand.vmem [shape: f32[32,8], index: 1, kind: input, shape index: {}]   ;;  %s1038_s2 = inlined_call_operand.vmem [shape: f32[1,8], index: 2, kind: input, shape index: {}]   ;;  %s1039_s3 = inlined_call_operand.vmem [shape: f32[8,32], index: 3, kind: input, shape index: {}]   ;;  %s1040_s4 = inlined_call_operand.vmem [shape: f32[1,32], index: 4, kind: input, shape index: {}]   ;;  %s1041_s5 = inlined_call_operand.hbm [shape: f32[2,32,256], index: 5, kind: output, shape index: {}]  }
   0x1   :  { %12 = vsyncpa [#allocation3 + $0x1], 0 }
   0x2   :  { %13 = vsyncpa [#allocation4], 0 }
   0x3   :  { %15 = vsyncpa [#allocation4 + $0x1], 0  ;;  %s817_s18 = smov 0   ;;  %s819_s19 = smov 0  }
   0x4   :  { %s821_s20 = smov 0   ;;  %s823_s21 = smov 0  }
   0x5 LB: > { %s838_s22 = sadd.s32 4294967295, %s776_s21   ;;  %s580_s23 = sadd.s32 4294967294, %s776_s21   ;;  %s776_s21 = sphi %s823_s21, %s1054_s21   ;;  %s772_s20 = sphi %s821_s20, %s1053_s20   ;;  %s768_s19 = sphi %s819_s19, %s1052_s19   ;;  %s764_s18 = sphi %s817_s18, %s1051_s18  }
   0x6   : > { %s842_s24 = sadd.s32 1, %s776_s21   ;;  %s28_s25 = sadd.s32 1, %s772_s20 }
   0x7   : > { %s25_s26 = ssub.s32 %s776_s21, %s842_s24  ;;  %p35_p0 = scmp.ne.s32.totalorder %s772_s20, %s768_s19 }
   0x8   : > { %p26_p1 = scmp.eq.s32.totalorder %s25_s26, 0  ;;  %p36_p2 = scmp.eq.s32.totalorder %s776_s21, 0 }
   0x9   : > { %p41_p3 = scmp.ne.s32.totalorder %s768_s19, %s764_s18  ;;  %p42_p4 = scmp.eq.s32.totalorder %s838_s22, 0 }
   0xa   : > { %s854_s27 = scalar_select %p26_p1, %s772_s20, %s28_s25  }
   0xb   : > { %p856_p5 = por %p36_p2, %p35_p0  ;;  %p860_p6 = por %p42_p4, %p41_p3 }
   0xc   : > { %p149_p7 = scmp.eq.s32.totalorder %s838_s22, 1  ;;  %p155_p8 = scmp.eq.s32.totalorder %s580_s23, 1 }
   0xd   : > { %p639_p10 = scmp.lt.s32.totalorder %s776_s21, 2  ;;  %s187_s7 = sand.u32 1, %s772_s20  }
   0xe   : > { %p867_p11 = por %p149_p7, %p35_p0  ;;  %p871_p12 = por %p155_p8, %p41_p3 }
   0xf   : > { %s596_s8 = sshll.u32 %s776_s21, 10  ;;  %s583_s9 = sshll.u32 %s187_s7, 6 }
  0x10   : > { %s1045_s30 = scalar_select %p867_p11, 1, 0 }
  0x11   : > { %s1046_s6 = scalar_select %p871_p12, 1, 0 }
  0x12   : > { %s880_s12 = scalar_lea.hbm %s1036_s0, %s596_s8  ;;  %s191_s13 = scalar_lea.vmem [#allocation2], %s583_s9 }
  0x13   : > { %s198_s14 = sshll.u32 %s191_s13, 4  ;;  %p884_p13 = pnand %p639_p10, %p856_p5  ;;  %s888_s14 = int_to_ptr.vmem [resolvable:$true] %s198_s14 }
  0x14   : > { %s890_s16 = scalar_lea.sflag [#allocation3], %s187_s7  ;;  %s680_s17 = scalar_lea.hbm %s880_s12, 1024 }
  0x15   : > { %p681_p0 = scmp.ne.s32.totalorder %s880_s12, %s680_s17  ;;  %p682_p1 = pneg %p884_p13 }
  0x16   : > { %s685_s26 = scalar_lea.hbm %s1036_s0, 2048  ;;  %p686_p4 = scmp.lt.u32.totalorder %s880_s12, %s1036_s0 }
  0x17   : > { %p683_p2 = pnand %p682_p1, %p681_p0  ;;  %p687_p5 = scmp.lt.u32.totalorder %s685_s26, %s680_s17 }
  0x18   : > { %p689_p8 = scmp.lt.u32.totalorder %s680_s17, %s880_s12 }
  0x19   : > { %p684_p3 = pneg %p683_p2  ;;  %p688_p7 = por %p687_p5, %p686_p4 }
  0x1b   : > { %p690_p10 = por %p689_p8, %p688_p7 }
  0x1d   : > { %p691_p9 = pnand %p690_p10, %p684_p3 }
  0x1f   : > { %694 = shalt.err (!%p691_p9)
}
  0x20   : > { %s695_s7 = scalar_lea.vmem %s888_s14, 1024  ;;  %s778_s9 = smov [#allocation2]  }
  0x21   : > { %p696_p0 = scmp.ne.s32.totalorder %s888_s14, %s695_s7  ;;  %s700_s10 = sshll.u32 %s778_s9, 4  ;;  %s701_s10 = int_to_ptr.vmem [resolvable:$false] %s700_s10 }
  0x22   : > { %s702_s11 = scalar_lea.vmem %s701_s10, 2048  ;;  %p703_p11 = scmp.lt.s32.totalorder %s888_s14, %s701_s10 }
  0x23   : > { %p698_p2 = pnand %p696_p0, %p682_p1  ;;  %p704_p4 = scmp.lt.s32.totalorder %s702_s11, %s695_s7 }
  0x25   : > { %p699_p12 = pneg %p698_p2  ;;  %p705_p5 = por %p704_p4, %p703_p11 }
  0x27   : > { %p706_p7 = pnand %p705_p5, %p699_p12 }
  0x29   : > { %709 = shalt.err (!%p706_p7)
}
  0x2a   : > { %s779_s13 = smov 256   ;;  %s780_s17 = smov 16  }
  0x2b   : > { %634 = dma.hbm_to_vmem [thread:$0]  (!%p884_p13), %s880_s12, 1024, %s888_s14, %s890_s16, %s779_s13, %s779_s13, %s780_s17  }
  0x2c   : > { %p586_p9 = scmp.ge.s32.totalorder %s776_s21, 1  ;;  %p206_p1 = scmp.lt.s32.totalorder %s776_s21, 3 }
  0x2e   : > { %p207_p3 = pnand %p586_p9, %p206_p1 }
  0x2f   : > { %s921_s23 = sand.u32 (!%p207_p3), 1, %s768_s19  }
  0x30   : > { %210 = sbr.rel (%p207_p3) target bundleno = 792 (0x318), region = 40  ;;  %s587_s25 = sshll.u32 (!%p207_p3), %s921_s23, 6 }
  0x31   : > { %s213_s26 = scalar_lea.sflag (!%p207_p3), [#allocation3], %s921_s23  ;;  %s216_s28 = scalar_lea.vmem (!%p207_p3), [#allocation2], %s587_s25 }
  0x37   : > { %755 = dma.done.wait (%p860_p6), %s213_s26, 1024  }
  0x38   : > { %757 = vsyncadd (%p860_p6), %s213_s26, 4294966272  ;;  %v931_v0 = vld [vmem:[%s216_s28] sm:$0xff]  ;;  %v933_v1 = vld [vmem:[%s216_s28 + $0x8] sm:$0xff]  ;;  %v781_v15 = vmov 0.0|0.0   ;;  %vm782_vm0 = vmmov 0   ;;  %v783_v19 = vmov 0.0   ;;  %v276_v20 = vlaneseq }
  0x39   : > { %v935_v2 = vld [vmem:[%s216_s28 + $0x20] sm:$0xff]  ;;  %v251_v3 = vadd.f32 %v933_v1, %v931_v0  ;;  %v939_v4 = vld [vmem:[%s216_s28 + $0x28] sm:$0xff]  ;;  %v941_v5 = vld [vmem:[%s216_s28 + $0x10] sm:$0xff]  ;;  %621 = vmatprep.subr.bf16.mxu0 %v781_v15  ;;  %613 = vmatprep.mubr.msk.f32.mxu0 %vm782_vm0, %v783_v19  ;;  %vm287_vm1 = vcmask 130112   ;;  %vm294_vm2 = vcmask 195712   ;;  %vm301_vm3 = vcmask 261312  }
  0x3a   : > { %v943_v6 = vld [vmem:[%s216_s28 + $0x18] sm:$0xff]  ;;  %v257_v7 = vadd.f32 %v939_v4, %v935_v2  ;;  %v947_v8 = vld [vmem:[%s216_s28 + $0x30] sm:$0xff]  ;;  %v267_v12 = vld [vmem:[%s1037_s1] sm:$0xff]  ;;  %616 = vmatprep.subr.mxu1 %v783_v19  ;;  %618 = vmatprep.mubr.msk.f32.mxu1 %vm782_vm0, %v783_v19  ;;  %v277_v21 = vand.u32 127, %v276_v20  ;;  %v279_v22 = vshrl.u32 %v276_v20, 7  ;;  %vm303_vm4 = vcmask 261120  }
  0x3b   : > { %v949_v9 = vld [vmem:[%s216_s28 + $0x38] sm:$0xff]  ;;  %252 = vadd.xlane.f32.xlu0 %v251_v3  ;;  %v254_v10 = vadd.f32 %v943_v6, %v941_v5  ;;  %v268_v13 = vld [vmem:[%s1037_s1 + $0x8] sm:$0xff]  ;;  %v269_v16 = vld [vmem:[%s1037_s1 + $0x10] sm:$0xff]  ;;  %vm379_vm5 = vcmask 64512   ;;  %s242_s29 = scalar_lea.vmem [#allocation5], %s587_s25  ;;  %s597_s14 = sshll.u32 %s838_s22, 10 }
  0x3c   : > { %258 = vadd.xlane.f32.xlu1 %v257_v7  ;;  %v260_v11 = vadd.f32 %v949_v9, %v947_v8  ;;  %v622_v14 = vpack.c.bf16 %v268_v13, %v267_v12  ;;  %v270_v17 = vld [vmem:[%s1037_s1 + $0x18] sm:$0xff]  ;;  %v282_v23 = vadd.s32 4294967288, %v277_v21  ;;  %v289_v25 = vadd.s32 4294967280, %v277_v21  ;;  %v377_v45 = vld [vmem:[%s1039_s3] sm:$0xff]  ;;  %s507_s12 = sshll.u32 %s242_s29, 4  ;;  %s990_s16 = scalar_lea.hbm %s1041_s5, %s597_s14  ;;  %s985_s12 = int_to_ptr.vmem [resolvable:$true] %s507_s12 }
  0x3d   : > { %v625_v18 = vpack.c.bf16 %v270_v17, %v269_v16  ;;  %v296_v26 = vadd.s32 4294967272, %v277_v21  ;;  %v280_v28 = vsub.s32 %v277_v21, %v279_v22  ;;  %617 = vmatpush3.msra.mxu1 %v377_v45  ;;  %v271_v46 = vld [vmem:[%s1038_s2] sm:$0x1]  ;;  %v460_v58 = vsub.s32 0, %v279_v22  ;;  %s494_s22 = scalar_lea.sflag [#allocation4], %s921_s23  ;;  %s710_s8 = scalar_lea.vmem %s985_s12, 1024 }
  0x3e   : > { %623 = vmatpush3.bf16.msra.mxu0 %v622_v14  ;;  %v285_v30 = vsub.s32 %v282_v23, %v279_v22  ;;  %v292_v31 = vsub.s32 %v289_v25, %v279_v22  ;;  %v378_v51 = vld [vmem:[%s1040_s4] sm:$0x1]  ;;  %p711_p6 = scmp.ne.s32.totalorder %s985_s12, %s710_s8  ;;  %p1048_p11 = scmp.ne.s32.totalorder %s1045_s30, 0 }
  0x3f   : > { %255 = vadd.xlane.f32.xlu0 %v254_v10  ;;  %624 = vmatprep.subr.bf16.mxu0 %v781_v15  ;;  %v299_v34 = vsub.s32 %v296_v26, %v279_v22  ;;  %s784_s7 = smov [#allocation5]  }
  0x40   : > { %261 = vadd.xlane.f32.xlu1 %v260_v11  ;;  %p712_p12 = pnand %p711_p6, %p1048_p11  ;;  %s714_s9 = sshll.u32 %s784_s7, 4  ;;  %s715_s9 = int_to_ptr.vmem [resolvable:$false] %s714_s9 }
  0x41   : > { %s716_s10 = scalar_lea.vmem %s715_s9, 2048  ;;  %p717_p8 = scmp.lt.s32.totalorder %s985_s12, %s715_s9 }
  0x42   : > { %626 = vmatpush3.bf16.msra.mxu0 %v625_v18  ;;  %p713_p13 = pneg %p712_p12  ;;  %p718_p10 = scmp.lt.s32.totalorder %s716_s10, %s710_s8 }
  0x44   : > { %p719_p0 = por %p718_p10, %p717_p8 }
  0x46   : > { %p720_p2 = pnand %p719_p0, %p713_p13 }
  0xc8   : > { %v253_v24 = vpop.xlane.xlu0 %252 }
  0xc9   : > { %v259_v27 = vpop.xlane.xlu1 %258  ;;  %v263_v29 = vmul.f32 0.00390625, %v253_v24 }
  0xca   : > { %v265_v32 = vmul.f32 0.00390625, %v259_v27 }
  0xcb   : > { %v281_v38 = vrot.slane %v263_v29, %v280_v28 }
  0xcc   : > { %v256_v33 = vpop.xlane.xlu0 %255  ;;  %v293_v40 = vrot.slane %v265_v32, %v292_v31 }
  0xcd   : > { %v264_v35 = vmul.f32 0.00390625, %v256_v33  ;;  %v262_v36 = vpop.xlane.xlu1 %261 }
  0xce   : > { %v266_v37 = vmul.f32 0.00390625, %v262_v36 }
  0xcf   : > { %v286_v39 = vrot.slane %v264_v35, %v285_v30 }
  0xd0   : > { %v300_v41 = vrot.slane %v266_v37, %v299_v34 }
  0xd1   : > { %v288_v42 = vsel %vm287_vm1, %v286_v39, %v281_v38 }
  0xd2   : > { %v295_v43 = vsel %vm294_vm2, %v293_v40, %v288_v42 }
  0xd3   : > { %v302_v44 = vsel %vm301_vm3, %v300_v41, %v295_v43 }
  0xd4   : > { %614 = vmatmul.mubr.msk.f32.vlgmr.msra.gmra.mrb[0].mxu0 %vm303_vm4, %v302_v44 }
 0x1a7   : > { %v372_v47 = vpop.f32.mrb[0].mxu0 }
 0x1a8   : > { %v373_v48 = vadd.f32 %v372_v47, %v271_v46  ;;  %v615_v49 = vpop.f32.mrb[1].mxu0 }
 0x1aa   : > { %v376_v50 = vmax.f32 %v373_v48, 0.0 }
 0x1ac   : > { %619 = vmatmul.mubr.msk.f32.vlgmr.msra.gmra.mrb[0].mxu1 %vm379_vm5, %v376_v50 }
 0x27f   : > { %v449_v52 = vpop.f32.mrb[0].mxu1 }
 0x280   : > { %v450_v53 = vadd.f32 %v449_v52, %v378_v51  ;;  %v620_v54 = vpop.f32.mrb[1].mxu1 }
 0x282   : > { %v453_v55 = vadd.f32 3.0, %v450_v53 }
 0x284   : > { %v455_v56 = vmul.f32 0.16666667, %v453_v55 }
 0x286   : > { %v456_v57 = vmax.f32 %v455_v56, 0.0 }
 0x288   : > { %v457_v59 = vmin.f32 %v456_v57, 1.0 }
 0x28a   : > { %v461_v60 = vrot.slane %v457_v59, %v460_v58 }
 0x28c   : > { %467 = vbcast.lane.b32.xlu1 %v461_v60, 264  ;;  %463 = vbcast.lane.b32.xlu0 %v461_v60, 256 }
 0x290   : > { %471 = vbcast.lane.b32.xlu1 %v461_v60, 272 }
 0x294   : > { %475 = vbcast.lane.b32.xlu1 %v461_v60, 280 }
 0x2fe   : > { %v468_v61 = vpop.permute.xlu1 %467  ;;  %v464_v62 = vpop.permute.xlu0 %463 }
 0x2ff   : > { %v479_v63 = vmul.f32 %v468_v61, %v941_v5  ;;  %v480_v3 = vmul.f32 %v468_v61, %v943_v6  ;;  %v477_v7 = vmul.f32 %v464_v62, %v931_v0  ;;  %v478_v10 = vmul.f32 %v464_v62, %v933_v1 }
 0x301   : > { %487 = vst [vmem:[%s242_s29 + $0x10] sm:$0xff] %v479_v63  ;;  %488 = vst [vmem:[%s242_s29 + $0x18] sm:$0xff] %v480_v3 }
 0x302   : > { %485 = vst [vmem:[%s242_s29] sm:$0xff] %v477_v7  ;;  %486 = vst [vmem:[%s242_s29 + $0x8] sm:$0xff] %v478_v10  ;;  %v472_v11 = vpop.permute.xlu1 %471 }
 0x303   : > { %v481_v12 = vmul.f32 %v472_v11, %v935_v2  ;;  %v482_v5 = vmul.f32 %v472_v11, %v939_v4 }
 0x305   : > { %489 = vst [vmem:[%s242_s29 + $0x20] sm:$0xff] %v481_v12  ;;  %490 = vst [vmem:[%s242_s29 + $0x28] sm:$0xff] %v482_v5 }
 0x306   : > { %v476_v0 = vpop.permute.xlu1 %475 }
 0x307   : > { %v483_v1 = vmul.f32 %v476_v0, %v947_v8  ;;  %v484_v2 = vmul.f32 %v476_v0, %v949_v9 }
 0x309   : > { %491 = vst [vmem:[%s242_s29 + $0x30] sm:$0xff] %v483_v1  ;;  %492 = vst [vmem:[%s242_s29 + $0x38] sm:$0xff] %v484_v2 }
 0x30a   : > { %723 = shalt.err (!%p720_p2)
}
 0x30b   : > { %s724_s11 = scalar_lea.hbm %s990_s16, 1024  ;;  %s728_s26 = scalar_lea.hbm %s1041_s5, 2048 }
 0x30c   : > { %p725_p4 = scmp.ne.s32.totalorder %s990_s16, %s724_s11  ;;  %p729_p9 = scmp.lt.u32.totalorder %s990_s16, %s1041_s5 }
 0x30d   : > { %p730_p1 = scmp.lt.u32.totalorder %s728_s26, %s724_s11  ;;  %p732_p6 = scmp.lt.u32.totalorder %s724_s11, %s990_s16 }
 0x30e   : > { %p726_p5 = pnand %p725_p4, %p1048_p11 }
 0x30f   : > { %p731_p3 = por %p730_p1, %p729_p9 }
 0x310   : > { %p727_p7 = pneg %p726_p5 }
 0x311   : > { %p733_p12 = por %p732_p6, %p731_p3 }
 0x313   : > { %p734_p13 = pnand %p733_p12, %p727_p7 }
 0x315   : > { %737 = shalt.err (!%p734_p13)
}
 0x316   : > { %s785_s14 = smov 256   ;;  %s786_s25 = smov 16  }
 0x317   : > { %629 = dma.vmem_to_hbm [thread:$0]  (%p1048_p11), %s985_s12, 1024, %s990_s16, %s494_s22, %s785_s14, %s785_s14, %s786_s25  }
 0x318 PF: > { %s522_s15 = sand.u32 1, %s764_s18   ;;  %p1049_p8 = scmp.ne.s32.totalorder %s1046_s6, 0 }
 0x319   : > { %p1050_p10 = scmp.ge.s32.totalorder %s776_s21, 2  ;;  %s523_s8 = scalar_lea.sflag [#allocation4], %s522_s15 }
 0x31b   : > { %p636_p0 = pnand %p1050_p10, %p1049_p8 }
 0x31d   : > { %759 = dma.done.wait (!%p636_p0), %s523_s8, 1024  }
 0x31e   : > { %761 = vsyncadd (!%p636_p0), %s523_s8, 4294966272  ;;  %p18_p2 = scmp.ge.s32.totalorder %s842_s24, 4   ;;  %s1051_s18 = smov %s768_s19 }
 0x31f   : > { %s1052_s19 = smov %s772_s20  ;;  %s1053_s20 = smov %s854_s27 }
 0x320   : > { %s1054_s21 = smov %s842_s24  ;;  %20 = sbr.rel (!%p18_p2) target bundleno = 5 (0x5), region = 85 }
 0x327   :  { %528 = vsyncpa [#allocation3], 1 }
 0x328   :  { %530 = vsyncpa [#allocation3 + $0x1], 1 }
 0x329   :  { %531 = vsyncpa [#allocation4], 1 }
 0x32a   :  { %533 = vsyncpa [#allocation4 + $0x1], 1 }

</bundles_post_ra>
